<compile_context>
chip_gen: v7x
topology: tpu7x:2x2x1
jax: 0.10.0
libtpu: 0.0.40
codegen_flags: <defaults>
</compile_context>

<pallas_src>
import jax
import jax.numpy as jnp
from jax import lax
from jax.experimental import pallas as pl
from jax.experimental.pallas import tpu as pltpu

LANE = 128
SUBLANE = 8


def _ceil_to(x, m):
    return -(-x // m) * m


# ----------------------------- hardware queries ------------------------------
def _num_tensorcores():
    """Best-effort per-chip TensorCore count (v5e/v6e: 1, v7x: 2)."""
    try:
        info = pltpu.get_tpu_info()
        for attr in ("num_tensorcores", "tensorcore_count", "num_cores",
                     "cores_per_chip", "num_tensor_cores"):
            v = getattr(info, attr, None)
            if isinstance(v, int) and v > 0:
                return v
    except Exception:
        pass
    try:
        if "v7" in jax.devices()[0].device_kind.lower():
            return 2
    except Exception:
        pass
    return 1


def _vmem_capacity_bytes():
    try:
        info = pltpu.get_tpu_info()
        v = getattr(info, "vmem_capacity_bytes", None)
        if isinstance(v, int) and v > 0:
            return v
    except Exception:
        pass
    return 64 * 1024 * 1024   # conservative default (v7x per-TC VMEM)


# ----------------------------- Pallas kernel ---------------------------------
def _backbone_kernel(patches_ref, wc_ref, wf_ref, bf_ref, out_ref):
    # patches_ref: (nblk, HW, K_pad)   bf16  -- im2col patches + ones (bias) column, lane-padded
    # wc_ref:      (K_pad, C_pad)      bf16  -- conv weight as a matmul, bias row folded in
    # wf_ref:      (C_pad, F_pad)      f32   -- linear head weight
    # bf_ref:      (1, F_pad)          f32
    # out_ref:     (nblk, F_pad)       f32   -- lane/sublane-dense output slab
    nblk, hw, k = patches_ref.shape
    c = wc_ref.shape[1]

    # 3x3 conv (+bias via the ones column) == one tall im2col matmul on the MXU, f32 accumulate.
    p = patches_ref[...].reshape(nblk * hw, k)                                   # bf16
    conv = jnp.dot(p, wc_ref[...], preferred_element_type=jnp.float32)           # (nblk*HW, C_pad)
    act = jnp.maximum(conv, 0.0)                                                 # f32 ReLU

    # Global average pool in f32 (spatial sum * 1/HW), then the tiny head matmul in f32.
    pooled = jnp.sum(act.reshape(nblk, hw, c), axis=1) * (1.0 / hw)              # (nblk, C_pad)
    feat = jnp.dot(pooled, wf_ref[...],
                   preferred_element_type=jnp.float32) + bf_ref[...]             # (nblk, F_pad)

    out_ref[...] = feat.astype(out_ref.dtype)


def _backbone_pallas(patches, wc, wf, bf, n_blocks, nblk, vmem_limit_bytes):
    n_pad, hw, k_pad = patches.shape
    c_pad = wc.shape[1]
    f_pad = wf.shape[1]

    flops = 2 * n_pad * hw * k_pad * c_pad + 2 * n_pad * c_pad * f_pad
    bytes_accessed = (patches.size * 2 + wc.size * 2 + wf.size * 4 + bf.size * 4
                      + n_pad * f_pad * 4)

    return pl.pallas_call(
        _backbone_kernel,
        out_shape=jax.ShapeDtypeStruct((n_pad, f_pad), jnp.float32),
        grid=(n_blocks,),
        in_specs=[
            pl.BlockSpec((nblk, hw, k_pad), lambda n: (n, 0, 0)),
            pl.BlockSpec((k_pad, c_pad), lambda n: (0, 0)),
            pl.BlockSpec((c_pad, f_pad), lambda n: (0, 0)),
            pl.BlockSpec((1, f_pad), lambda n: (0, 0)),
        ],
        out_specs=pl.BlockSpec((nblk, f_pad), lambda n: (n, 0)),
        compiler_params=pltpu.CompilerParams(
            dimension_semantics=("parallel",),
            vmem_limit_bytes=vmem_limit_bytes),
        cost_estimate=pl.CostEstimate(flops=flops, transcendentals=0,
                                      bytes_accessed=bytes_accessed),
    )(patches, wc, wf, bf)


# ------------------------------- glue (JAX) ----------------------------------
def _im2col_3x3_bias(x_nchw, k_pad):
    """NCHW -> im2col patches (N, H*W, K_pad): 3x3 'same' patches (ky,kx,cin order),
    a trailing ones column (matches the folded conv-bias row), zero lane-padding to K_pad."""
    x = jnp.transpose(x_nchw, (0, 2, 3, 1))  # NHWC
    N, H, W, C = x.shape
    xp = jnp.pad(x, ((0, 0), (1, 1), (1, 1), (0, 0)))
    cols = [xp[:, dy:dy + H, dx:dx + W, :] for dy in range(3) for dx in range(3)]
    cols.append(jnp.ones((N, H, W, 1), x.dtype))                 # bias column
    patches = jnp.concatenate(cols, axis=-1).reshape(N, H * W, 9 * C + 1)
    if k_pad > 9 * C + 1:
        patches = jnp.pad(patches, ((0, 0), (0, 0), (0, k_pad - (9 * C + 1))))
    return patches


def init_params(key, cin, cconv, feat):
    """Raw f32 parameters in PyTorch layouts (Conv2d OIHW + bias, Linear (out,in) + bias)."""
    k1, k2, k3, k4 = jax.random.split(key, 4)
    w_conv = 0.1 * jax.random.normal(k1, (cconv, cin, 3, 3), jnp.float32)
    b_conv = 0.1 * jax.random.normal(k2, (cconv,), jnp.float32)
    w_fc = 0.1 * jax.random.normal(k3, (feat, cconv), jnp.float32)
    b_fc = 0.1 * jax.random.normal(k4, (feat,), jnp.float32)
    return w_conv, b_conv, w_fc, b_fc


def prepare_params(params):
    """One-time weight prep (hoisted out of the per-call path)."""
    w_conv, b_conv, w_fc, b_fc = params
    cconv, cin = w_conv.shape[0], w_conv.shape[1]
    feat = w_fc.shape[0]
    k_raw = 9 * cin + 1                                   # + bias column
    k_pad = _ceil_to(k_raw, LANE)
    c_pad = _ceil_to(cconv, LANE)
    f_pad = _ceil_to(feat, LANE)

    # Conv weight (Cout,Cin,KH,KW) -> matmul (ky,kx,cin, cout), bias folded in as the last row.
    wc = jnp.transpose(w_conv, (2, 3, 1, 0)).reshape(9 * cin, cconv)
    wc = jnp.concatenate([wc, b_conv[None, :]], axis=0)
    wc = jnp.pad(wc, ((0, k_pad - k_raw), (0, c_pad - cconv))).astype(jnp.bfloat16)

    # Head stays f32; zero-padded rows meet the zero-padded conv channels exactly.
    wf = jnp.pad(w_fc.T, ((0, c_pad - cconv), (0, f_pad - feat)))
    bf = jnp.pad(b_fc[None, :], ((0, 0), (0, f_pad - feat)))
    return wc, wf, bf


def _select_grid(n_total, hw, k_pad, c_pad, f_pad):
    """Generation-aware grid: 1 step on 1-TC chips, >=2 on multi-TC; nblk is VMEM-budgeted and
    a multiple of 8 sublanes whenever the grid is split."""
    n_cores = _num_tensorcores()
    vmem_cap = _vmem_capacity_bytes()

    fixed = 2 * (k_pad * c_pad * 2 + c_pad * f_pad * 4 + f_pad * 4)       # weights (dbl-buffered)
    per_img = 2 * (hw * k_pad * 2 + f_pad * 4)                            # patch + out tiles
    budget = int(0.4 * vmem_cap)
    max_nblk = max(1, (budget - fixed) // per_img)

    n_blocks = max(1, n_cores)
    while True:
        nblk = -(-n_total // n_blocks)
        if n_blocks > 1:
            nblk = _ceil_to(nblk, SUBLANE)                 # full-sublane output stores
        if nblk <= max_nblk or nblk <= SUBLANE:
            break
        n_blocks += max(1, n_cores)

    step_bytes = fixed + nblk * per_img + nblk * hw * c_pad * 4           # + conv intermediate
    vmem_limit = min(int(0.9 * vmem_cap), max(32 << 20, 2 * step_bytes))
    return n_blocks, nblk, vmem_limit


def siamese_forward(input1, input2, prepared, feat):
    """Equivalent of SiameseNetwork_space.forward: same backbone, shared weights, two inputs."""
    wc, wf, bf = prepared
    n1 = input1.shape[0]
    H, W = input1.shape[2], input1.shape[3]
    hw = H * W
    k_pad, c_pad = wc.shape
    f_pad = wf.shape[1]

    # Fuse the two shared-weight branches into a single kernel launch.
    x = jnp.concatenate([input1, input2], axis=0)                         # (2N, Cin, H, W)
    patches = _im2col_3x3_bias(x, k_pad).astype(jnp.bfloat16)             # (2N, HW, K_pad)
    n_total = patches.shape[0]

    n_blocks, nblk, vmem_limit = _select_grid(n_total, hw, k_pad, c_pad, f_pad)
    n_pad = n_blocks * nblk
    if n_pad != n_total:
        patches = jnp.pad(patches, ((0, n_pad - n_total), (0, 0), (0, 0)))

    out = _backbone_pallas(patches, wc, wf, bf, n_blocks, nblk, vmem_limit)   # (n_pad, F_pad)
    out = out[:n_total, :feat]
    return out[:n1], out[n1:]


def reference_forward(x1, x2, params):
    """Pure-JAX f32 reference of the synthesized backbone (for tolerance validation)."""
    w_conv, b_conv, w_fc, b_fc = params

    def one(x):
        y = lax.conv_general_dilated(x, w_conv, window_strides=(1, 1), padding="SAME",
                                     dimension_numbers=("NCHW", "OIHW", "NCHW"))
        y = jnp.maximum(y + b_conv[None, :, None, None], 0.0)
        pooled = jnp.mean(y, axis=(2, 3))
        return pooled @ w_fc.T + b_fc[None, :]

    return one(x1), one(x2)


if __name__ == "__main__":
    key = jax.random.PRNGKey(0)
    k_in1, k_in2, k_par = jax.random.split(key, 3)

    N, Cin, H, W = 2, 4, 16, 16          # NCHW, like the PyTorch module
    Cconv, Feat = 32, 32

    x1 = jax.random.normal(k_in1, (N, Cin, H, W), jnp.float32)
    x2 = jax.random.normal(k_in2, (N, Cin, H, W), jnp.float32)
    params = init_params(k_par, Cin, Cconv, Feat)

    # One-time parameter prep (hoisted out of the per-call path).
    prepared = prepare_params(params)
    prepared = jax.block_until_ready(prepared)

    fwd = jax.jit(siamese_forward, static_argnames=("feat",))
    out1, out2 = fwd(x1, x2, prepared, feat=Feat)
    jax.block_until_ready((out1, out2))

    assert out1.shape == (N, Feat) and out2.shape == (N, Feat)
    assert jnp.all(jnp.isfinite(out1)) and jnp.all(jnp.isfinite(out2))

    # Tolerance check vs. the f32 reference (bf16 patches/conv weight => ~1e-2 level deviation).
    ref1, ref2 = reference_forward(x1, x2, params)
    assert jnp.allclose(out1, ref1, atol=5e-2, rtol=5e-2), float(jnp.max(jnp.abs(out1 - ref1)))
    assert jnp.allclose(out2, ref2, atol=5e-2, rtol=5e-2), float(jnp.max(jnp.abs(out2 - ref2)))

    print("KERNEL_OK")
</pallas_src>

<mosaic_0001>
module attributes {stable_mosaic.version = 11 : i64} {
  func.func @_backbone_kernel(%arg0: i32, %arg1: memref<4x256x128xbf16, #tpu.memory_space<vmem>>, %arg2: memref<128x128xbf16, #tpu.memory_space<vmem>>, %arg3: memref<128x128xf32, #tpu.memory_space<vmem>>, %arg4: memref<1x128xf32, #tpu.memory_space<vmem>>, %arg5: memref<4x128xf32, #tpu.memory_space<vmem>>) attributes {dimension_semantics = [#tpu.dimension_semantics<parallel>], iteration_bounds = array<i64: 1>, scalar_prefetch = 0 : i64, scratch_operands = 0 : i64, tpu.core_type = #tpu.core_type<tc>, window_params = [{transform_indices = @transform_0, window_bounds = array<i64: 4, 256, 128>}, {pipeline_mode = #tpu.pipeline_mode<synchronous>, transform_indices = @transform_1, window_bounds = array<i64: 128, 128>}, {pipeline_mode = #tpu.pipeline_mode<synchronous>, transform_indices = @transform_2, window_bounds = array<i64: 128, 128>}, {pipeline_mode = #tpu.pipeline_mode<synchronous>, transform_indices = @transform_3, window_bounds = array<i64: 1, 128>}, {transform_indices = @transform_4, window_bounds = array<i64: 4, 128>}]} {
    %c0 = arith.constant 0 : index
    %c0_0 = arith.constant 0 : index
    %c0_1 = arith.constant 0 : index
    %0 = vector.load %arg1[%c0, %c0_0, %c0_1] : memref<4x256x128xbf16, #tpu.memory_space<vmem>>, vector<4x256x128xbf16>
    %1 = vector.shape_cast %0 : vector<4x256x128xbf16> to vector<1024x128xbf16>
    %c0_2 = arith.constant 0 : index
    %c0_3 = arith.constant 0 : index
    %2 = vector.load %arg2[%c0_2, %c0_3] : memref<128x128xbf16, #tpu.memory_space<vmem>>, vector<128x128xbf16>
    %cst = arith.constant dense<0.000000e+00> : vector<1024x128xf32>
    %3 = tpu.matmul %1, %2, %cst {dimension_numbers = #tpu.dot_dimension_numbers<[1], [0], [0], [1], [0, 0, 1, 1], [], []>} : vector<1024x128xbf16>, vector<128x128xbf16>, vector<1024x128xf32> -> vector<1024x128xf32>
    %cst_4 = arith.constant 0.000000e+00 : f32
    %4 = vector.broadcast %cst_4 : f32 to vector<1024x128xf32>
    %5 = arith.maximumf %3, %4 : vector<1024x128xf32>
    %6 = vector.shape_cast %5 : vector<1024x128xf32> to vector<4x256x128xf32>
    %cst_5 = arith.constant dense<0.000000e+00> : vector<4x128xf32>
    %7 = vector.multi_reduction <add>, %6, %cst_5 [1] : vector<4x256x128xf32> to vector<4x128xf32>
    %cst_6 = arith.constant 3.906250e-03 : f32
    %8 = vector.broadcast %cst_6 : f32 to vector<4x128xf32>
    %9 = arith.mulf %7, %8 : vector<4x128xf32>
    %c0_7 = arith.constant 0 : index
    %c0_8 = arith.constant 0 : index
    %10 = vector.load %arg3[%c0_7, %c0_8] : memref<128x128xf32, #tpu.memory_space<vmem>>, vector<128x128xf32>
    %cst_9 = arith.constant dense<0.000000e+00> : vector<4x128xf32>
    %11 = tpu.matmul %9, %10, %cst_9 {dimension_numbers = #tpu.dot_dimension_numbers<[1], [0], [0], [1], [0, 0, 1, 1], [], []>} : vector<4x128xf32>, vector<128x128xf32>, vector<4x128xf32> -> vector<4x128xf32>
    %c0_10 = arith.constant 0 : index
    %c0_11 = arith.constant 0 : index
    %12 = vector.load %arg4[%c0_10, %c0_11] : memref<1x128xf32, #tpu.memory_space<vmem>>, vector<1x128xf32>
    %13 = vector.broadcast %12 : vector<1x128xf32> to vector<4x128xf32>
    %14 = arith.addf %11, %13 : vector<4x128xf32>
    %c0_12 = arith.constant 0 : index
    %c0_13 = arith.constant 0 : index
    %15 = vector.load %arg5[%c0_12, %c0_13] : memref<4x128xf32, #tpu.memory_space<vmem>>, vector<4x128xf32>
    tpu.vector_store %arg5[%c0_12, %c0_13], %14 {strides = array<i32>} : memref<4x128xf32, #tpu.memory_space<vmem>>, vector<4x128xf32>,
    return
  }
  func.func @transform_0(%arg0: i32) -> (i32, i32, i32) {
    %c0_i32 = arith.constant 0 : i32
    %c0_i32_0 = arith.constant 0 : i32
    %c0_i32_1 = arith.constant 0 : i32
    return %arg0, %c0_i32, %c0_i32_0 : i32, i32, i32
  }
  func.func @transform_1(%arg0: i32) -> (i32, i32) {
    %c0_i32 = arith.constant 0 : i32
    %c0_i32_0 = arith.constant 0 : i32
    %c0_i32_1 = arith.constant 0 : i32
    return %c0_i32, %c0_i32_0 : i32, i32
  }
  func.func @transform_2(%arg0: i32) -> (i32, i32) {
    %c0_i32 = arith.constant 0 : i32
    %c0_i32_0 = arith.constant 0 : i32
    %c0_i32_1 = arith.constant 0 : i32
    return %c0_i32, %c0_i32_0 : i32, i32
  }
  func.func @transform_3(%arg0: i32) -> (i32, i32) {
    %c0_i32 = arith.constant 0 : i32
    %c0_i32_0 = arith.constant 0 : i32
    %c0_i32_1 = arith.constant 0 : i32
    return %c0_i32, %c0_i32_0 : i32, i32
  }
  func.func @transform_4(%arg0: i32) -> (i32, i32) {
    %c0_i32 = arith.constant 0 : i32
    %c0_i32_0 = arith.constant 0 : i32
    return %arg0, %c0_i32 : i32, i32
  }
}

</mosaic_0001>

<bundles_post_ra>
// kernel: siamese_forward.1
= control target key start
LH: loop header
LB: loop body
LE: loop exit
PB: predicated region body
PF: predicated region fallthrough
CT: control target
= control target key end

     0   :  { %vm1985_vm0 = vmmov 0   ;;  %vm1446_vm1 = vcmask 1041409   ;;  %vm1448_vm2 = vcmask 1042434   ;;  %vm1450_vm3 = vcmask 1043459   ;;  %s2385_s1 = inlined_call_operand.vmem [shape: bf16[128,128], index: 1, kind: input, shape index: {}]   ;;  %s2386_s0 = inlined_call_operand.vmem [shape: bf16[4,256,128], index: 0, kind: input, shape index: {}]   ;;  %s2387_s2 = inlined_call_operand.vmem [shape: f32[128,128], index: 2, kind: input, shape index: {}]   ;;  %s2388_s3 = inlined_call_operand.vmem [shape: f32[1,128], index: 3, kind: input, shape index: {}]   ;;  %s2389_s4 = inlined_call_operand.vmem [shape: f32[4,128], index: 4, kind: output, shape index: {}]  }
   0x1   :  { %v1912_v0 = vld [vmem:[%s2385_s1] sm:$0xff]   ;;  %v1913_v1 = vld [vmem:[%s2385_s1 + $0x8] sm:$0xff]   ;;  %v1914_v2 = vld [vmem:[%s2385_s1 + $0x10] sm:$0xff]  }
   0x2   :  { %1690 = vmatprep.subr.bf16.mxu0 %v1912_v0  ;;  %1893 = vmatprep.subr.bf16.mxu1 %v1912_v0  ;;  %v1915_v3 = vld [vmem:[%s2385_s1 + $0x18] sm:$0xff]   ;;  %v1920_v4 = vld [vmem:[%s2386_s0] sm:$0xff]   ;;  %v1917_v6 = vld [vmem:[%s2385_s1 + $0x28] sm:$0xff]  }
   0x3   :  { %1691 = vmatpush3.bf16.msra.mxu0 %v1912_v0  ;;  %1901 = vmatpush3.bf16.msra.mxu1 %v1912_v0  ;;  %v1916_v5 = vld [vmem:[%s2385_s1 + $0x20] sm:$0xff]   ;;  %v1918_v7 = vld [vmem:[%s2385_s1 + $0x30] sm:$0xff]   ;;  %v1919_v8 = vld [vmem:[%s2385_s1 + $0x38] sm:$0xff]  }
   0x4   :  { %1692 = vmatprep.subr.bf16.mxu0 %v1913_v1  ;;  %1894 = vmatprep.subr.bf16.mxu1 %v1913_v1  ;;  %v1936_v9 = vld [vmem:[%s2386_s0 + $0x110] sm:$0xff]   ;;  %v1921_v10 = vld [vmem:[%s2386_s0 + $0x8] sm:$0xff]   ;;  %v1937_v12 = vld [vmem:[%s2386_s0 + $0x118] sm:$0xff]  }
   0x5   :  { %1706 = vmatprep.mubr.bf16.mxu0 %v1920_v4  ;;  %1774 = vmatprep.mubr.bf16.mxu1 %v1936_v9  ;;  %v1922_v11 = vld [vmem:[%s2386_s0 + $0x10] sm:$0xff]   ;;  %v1940_v13 = vld [vmem:[%s2386_s0 + $0x120] sm:$0xff]   ;;  %v1923_v14 = vld [vmem:[%s2386_s0 + $0x18] sm:$0xff]  }
   0x6   :  { %v1924_v15 = vld [vmem:[%s2386_s0 + $0x20] sm:$0xff]   ;;  %v1941_v16 = vld [vmem:[%s2386_s0 + $0x128] sm:$0xff]   ;;  %v1944_v17 = vld [vmem:[%s2386_s0 + $0x130] sm:$0xff]  }
   0x7   :  { %1693 = vmatpush3.bf16.msra.mxu0 %v1913_v1  ;;  %1902 = vmatpush3.bf16.msra.mxu1 %v1913_v1  ;;  %v1925_v18 = vld [vmem:[%s2386_s0 + $0x28] sm:$0xff]   ;;  %v1926_v19 = vld [vmem:[%s2386_s0 + $0x30] sm:$0xff]   ;;  %v1945_v20 = vld [vmem:[%s2386_s0 + $0x138] sm:$0xff]  }
   0x8   :  { %1694 = vmatprep.subr.bf16.mxu0 %v1914_v2  ;;  %1895 = vmatprep.subr.bf16.mxu1 %v1914_v2  ;;  %v1948_v21 = vld [vmem:[%s2386_s0 + $0x140] sm:$0xff]   ;;  %v1927_v22 = vld [vmem:[%s2386_s0 + $0x38] sm:$0xff]   ;;  %v1949_v24 = vld [vmem:[%s2386_s0 + $0x148] sm:$0xff]  }
   0x9   :  { %v1928_v23 = vld [vmem:[%s2386_s0 + $0x40] sm:$0xff]   ;;  %v1952_v25 = vld [vmem:[%s2386_s0 + $0x150] sm:$0xff]   ;;  %v1929_v26 = vld [vmem:[%s2386_s0 + $0x48] sm:$0xff]  }
   0xa   :  { %v1930_v27 = vld [vmem:[%s2386_s0 + $0x50] sm:$0xff]   ;;  %v1953_v28 = vld [vmem:[%s2386_s0 + $0x158] sm:$0xff]   ;;  %v1956_v29 = vld [vmem:[%s2386_s0 + $0x160] sm:$0xff]  }
   0xb   :  { %1695 = vmatpush3.bf16.msra.mxu0 %v1914_v2  ;;  %1903 = vmatpush3.bf16.msra.mxu1 %v1914_v2  ;;  %v1931_v30 = vld [vmem:[%s2386_s0 + $0x58] sm:$0xff]   ;;  %v1932_v31 = vld [vmem:[%s2386_s0 + $0x60] sm:$0xff]   ;;  %v1957_v32 = vld [vmem:[%s2386_s0 + $0x168] sm:$0xff]  }
   0xc   :  { %1696 = vmatprep.subr.bf16.mxu0 %v1915_v3  ;;  %1896 = vmatprep.subr.bf16.mxu1 %v1915_v3  ;;  %v1960_v33 = vld [vmem:[%s2386_s0 + $0x170] sm:$0xff]   ;;  %v1933_v34 = vld [vmem:[%s2386_s0 + $0x68] sm:$0xff]   ;;  %v1961_v35 = vld [vmem:[%s2386_s0 + $0x178] sm:$0xff]  }
   0xd   :  { %v1934_v36 = vld [vmem:[%s2386_s0 + $0x70] sm:$0xff]   ;;  %v1964_v37 = vld [vmem:[%s2386_s0 + $0x180] sm:$0xff]   ;;  %v1935_v38 = vld [vmem:[%s2386_s0 + $0x78] sm:$0xff]  }
   0xe   :  { %v1965_v39 = vld [vmem:[%s2386_s0 + $0x188] sm:$0xff]   ;;  %v1938_v40 = vld [vmem:[%s2386_s0 + $0x80] sm:$0xff]   ;;  %v1968_v41 = vld [vmem:[%s2386_s0 + $0x190] sm:$0xff]  }
   0xf   :  { %1697 = vmatpush3.bf16.msra.mxu0 %v1915_v3  ;;  %1904 = vmatpush3.bf16.msra.mxu1 %v1915_v3  ;;  %v1939_v42 = vld [vmem:[%s2386_s0 + $0x88] sm:$0xff]   ;;  %v1969_v43 = vld [vmem:[%s2386_s0 + $0x198] sm:$0xff]   ;;  %v1942_v44 = vld [vmem:[%s2386_s0 + $0x90] sm:$0xff]  }
  0x10   :  { %1698 = vmatprep.subr.bf16.mxu0 %v1916_v5  ;;  %1897 = vmatprep.subr.bf16.mxu1 %v1916_v5  ;;  %v1972_v45 = vld [vmem:[%s2386_s0 + $0x1a0] sm:$0xff]   ;;  %v1943_v46 = vld [vmem:[%s2386_s0 + $0x98] sm:$0xff]   ;;  %v1973_v47 = vld [vmem:[%s2386_s0 + $0x1a8] sm:$0xff]  }
  0x11   :  { %v1946_v48 = vld [vmem:[%s2386_s0 + $0xa0] sm:$0xff]   ;;  %v1974_v49 = vld [vmem:[%s2386_s0 + $0x1b0] sm:$0xff]   ;;  %v1947_v50 = vld [vmem:[%s2386_s0 + $0xa8] sm:$0xff]  }
  0x12   :  { %v1975_v51 = vld [vmem:[%s2386_s0 + $0x1b8] sm:$0xff]   ;;  %v1950_v52 = vld [vmem:[%s2386_s0 + $0xb0] sm:$0xff]   ;;  %v1976_v53 = vld [vmem:[%s2386_s0 + $0x1c0] sm:$0xff]  }
  0x13   :  { %1699 = vmatpush3.bf16.msra.mxu0 %v1916_v5  ;;  %1905 = vmatpush3.bf16.msra.mxu1 %v1916_v5  ;;  %v1951_v54 = vld [vmem:[%s2386_s0 + $0xb8] sm:$0xff]   ;;  %v1977_v55 = vld [vmem:[%s2386_s0 + $0x1c8] sm:$0xff]   ;;  %v1954_v56 = vld [vmem:[%s2386_s0 + $0xc0] sm:$0xff]  }
  0x14   :  { %1700 = vmatprep.subr.bf16.mxu0 %v1917_v6  ;;  %1898 = vmatprep.subr.bf16.mxu1 %v1917_v6  ;;  %v1978_v57 = vld [vmem:[%s2386_s0 + $0x1d0] sm:$0xff]   ;;  %v1955_v58 = vld [vmem:[%s2386_s0 + $0xc8] sm:$0xff]   ;;  %v1979_v59 = vld [vmem:[%s2386_s0 + $0x1d8] sm:$0xff]  }
  0x15   :  { %v1958_v60 = vld [vmem:[%s2386_s0 + $0xd0] sm:$0xff]   ;;  %v1980_v61 = vld [vmem:[%s2386_s0 + $0x1e0] sm:$0xff]   ;;  %v1959_v62 = vld [vmem:[%s2386_s0 + $0xd8] sm:$0xff]  }
  0x16   :  { %v1981_v63 = vld [vmem:[%s2386_s0 + $0x1e8] sm:$0xff]   ;;  %v1962_v0 = vld [vmem:[%s2386_s0 + $0xe0] sm:$0xff]   ;;  %v1982_v1 = vld [vmem:[%s2386_s0 + $0x1f0] sm:$0xff]  }
  0x17   :  { %1701 = vmatpush3.bf16.msra.mxu0 %v1917_v6  ;;  %1906 = vmatpush3.bf16.msra.mxu1 %v1917_v6  ;;  %v1963_v2 = vld [vmem:[%s2386_s0 + $0xe8] sm:$0xff]   ;;  %v1983_v3 = vld [vmem:[%s2386_s0 + $0x1f8] sm:$0xff]   ;;  %v1966_v4 = vld [vmem:[%s2386_s0 + $0xf0] sm:$0xff]  }
  0x18   :  { %1702 = vmatprep.subr.bf16.mxu0 %v1918_v7  ;;  %1899 = vmatprep.subr.bf16.mxu1 %v1918_v7  ;;  %v1967_v5 = vld [vmem:[%s2386_s0 + $0xf8] sm:$0xff]   ;;  %v1970_v6 = vld [vmem:[%s2386_s0 + $0x100] sm:$0xff]  }
  0x19   :  { %v1419_v9 = vld [vmem:[%s2387_s2] sm:$0xff] }
  0x1b   :  { %1703 = vmatpush3.bf16.msra.mxu0 %v1918_v7  ;;  %1907 = vmatpush3.bf16.msra.mxu1 %v1918_v7  ;;  %v1971_v7 = vld [vmem:[%s2386_s0 + $0x108] sm:$0xff]  }
  0x1c   :  { %1704 = vmatprep.subr.bf16.mxu0 %v1919_v8  ;;  %1900 = vmatprep.subr.bf16.mxu1 %v1919_v8 }
  0x1f   :  { %1705 = vmatpush3.bf16.msra.mxu0 %v1919_v8  ;;  %1908 = vmatpush3.bf16.msra.mxu1 %v1919_v8  ;;  %v1984_v8 = vmov 0.0|0.0  }
  0x20   :  { %1869 = vmatprep.subr.bf16.mxu1 %v1984_v8 }
  0x22   :  { %1707 = vmatmul.mubr.bf16.vlgmr.msra.gmra.mrb[0].mxu0 %v1921_v10  ;;  %1775 = vmatmul.mubr.bf16.vlgmr.msra.gmra.mrb[0].mxu1 %v1937_v12  ;;  %v1420_v10 = vld [vmem:[%s2387_s2 + $0x8] sm:$0xff]  ;;  %v1421_v12 = vld [vmem:[%s2387_s2 + $0x10] sm:$0xff] }
  0x23   :  { %1710 = vmatprep.mubr.bf16.mxu0 %v1922_v11  ;;  %1778 = vmatprep.mubr.bf16.mxu1 %v1940_v13  ;;  %v1870_v11 = vpack.c.bf16 %v1420_v10, %v1419_v9  ;;  %v1422_v13 = vld [vmem:[%s2387_s2 + $0x18] sm:$0xff] }
  0x25   :  { %1871 = vmatpush3.bf16.msra.mxu1 %v1870_v11 }
  0x26   :  { %1872 = vmatprep.subr.bf16.mxu1 %v1984_v8 }
  0x2a   :  { %1711 = vmatmul.mubr.bf16.gmra.mrb[4].mxu0 %v1923_v14  ;;  %1779 = vmatmul.mubr.bf16.gmra.mrb[4].mxu1 %v1941_v16  ;;  %v1873_v14 = vpack.c.bf16 %v1422_v13, %v1421_v12  ;;  %v1424_v16 = vld [vmem:[%s2387_s2 + $0x28] sm:$0xff] }
  0x2b   :  { %1714 = vmatprep.mubr.bf16.mxu0 %v1924_v15  ;;  %1782 = vmatprep.mubr.bf16.mxu1 %v1944_v17  ;;  %v1423_v15 = vld [vmem:[%s2387_s2 + $0x20] sm:$0xff] }
  0x2c   :  { %1874 = vmatpush3.bf16.msra.mxu1 %v1873_v14  ;;  %v1876_v17 = vpack.c.bf16 %v1424_v16, %v1423_v15 }
  0x2d   :  { %1875 = vmatprep.subr.bf16.mxu1 %v1984_v8 }
  0x30   :  { %1877 = vmatpush3.bf16.msra.mxu1 %v1876_v17 }
  0x31   :  { %1878 = vmatprep.subr.bf16.mxu1 %v1984_v8 }
  0x32   :  { %1715 = vmatmul.mubr.bf16.gmra.mrb[8].mxu0 %v1925_v18  ;;  %1783 = vmatmul.mubr.bf16.gmra.mrb[8].mxu1 %v1945_v20 }
  0x33   :  { %1718 = vmatprep.mubr.bf16.mxu0 %v1926_v19  ;;  %1786 = vmatprep.mubr.bf16.mxu1 %v1948_v21 }
  0x3a   :  { %1719 = vmatmul.mubr.bf16.gmra.mrb[12].mxu0 %v1927_v22  ;;  %1787 = vmatmul.mubr.bf16.gmra.mrb[12].mxu1 %v1949_v24 }
  0x3b   :  { %1722 = vmatprep.mubr.bf16.mxu0 %v1928_v23  ;;  %1790 = vmatprep.mubr.bf16.mxu1 %v1952_v25 }
  0x42   :  { %1723 = vmatmul.mubr.bf16.gmra.mrb[16].mxu0 %v1929_v26  ;;  %1791 = vmatmul.mubr.bf16.gmra.mrb[16].mxu1 %v1953_v28 }
  0x43   :  { %1726 = vmatprep.mubr.bf16.mxu0 %v1930_v27  ;;  %1794 = vmatprep.mubr.bf16.mxu1 %v1956_v29 }
  0x4a   :  { %1727 = vmatmul.mubr.bf16.gmra.mrb[20].mxu0 %v1931_v30  ;;  %1795 = vmatmul.mubr.bf16.gmra.mrb[20].mxu1 %v1957_v32 }
  0x4b   :  { %1730 = vmatprep.mubr.bf16.mxu0 %v1932_v31  ;;  %1798 = vmatprep.mubr.bf16.mxu1 %v1960_v33 }
  0x52   :  { %1731 = vmatmul.mubr.bf16.gmra.mrb[24].mxu0 %v1933_v34  ;;  %1799 = vmatmul.mubr.bf16.gmra.mrb[24].mxu1 %v1961_v35 }
  0x53   :  { %1734 = vmatprep.mubr.bf16.mxu0 %v1934_v36  ;;  %1802 = vmatprep.mubr.bf16.mxu1 %v1964_v37 }
  0x5a   :  { %1735 = vmatmul.mubr.bf16.gmra.mrb[28].mxu0 %v1935_v38  ;;  %1803 = vmatmul.mubr.bf16.gmra.mrb[28].mxu1 %v1965_v39 }
  0x5b   :  { %1738 = vmatprep.mubr.bf16.mxu0 %v1938_v40  ;;  %1806 = vmatprep.mubr.bf16.mxu1 %v1968_v41 }
  0x62   :  { %1739 = vmatmul.mubr.bf16.gmra.mrb[32].mxu0 %v1939_v42  ;;  %1807 = vmatmul.mubr.bf16.gmra.mrb[32].mxu1 %v1969_v43 }
  0x63   :  { %1742 = vmatprep.mubr.bf16.mxu0 %v1942_v44  ;;  %1810 = vmatprep.mubr.bf16.mxu1 %v1972_v45 }
  0x6a   :  { %1743 = vmatmul.mubr.bf16.gmra.mrb[36].mxu0 %v1943_v46  ;;  %1811 = vmatmul.mubr.bf16.gmra.mrb[36].mxu1 %v1973_v47 }
  0x6b   :  { %1746 = vmatprep.mubr.bf16.mxu0 %v1946_v48  ;;  %1814 = vmatprep.mubr.bf16.mxu1 %v1974_v49 }
  0x72   :  { %1747 = vmatmul.mubr.bf16.gmra.mrb[40].mxu0 %v1947_v50  ;;  %1815 = vmatmul.mubr.bf16.gmra.mrb[40].mxu1 %v1975_v51 }
  0x73   :  { %1750 = vmatprep.mubr.bf16.mxu0 %v1950_v52  ;;  %1818 = vmatprep.mubr.bf16.mxu1 %v1976_v53 }
  0x7a   :  { %1751 = vmatmul.mubr.bf16.gmra.mrb[44].mxu0 %v1951_v54  ;;  %1819 = vmatmul.mubr.bf16.gmra.mrb[44].mxu1 %v1977_v55 }
  0x7b   :  { %1754 = vmatprep.mubr.bf16.mxu0 %v1954_v56  ;;  %1822 = vmatprep.mubr.bf16.mxu1 %v1978_v57 }
  0x82   :  { %1755 = vmatmul.mubr.bf16.gmra.mrb[48].mxu0 %v1955_v58  ;;  %1823 = vmatmul.mubr.bf16.gmra.mrb[48].mxu1 %v1979_v59 }
  0x83   :  { %1758 = vmatprep.mubr.bf16.mxu0 %v1958_v60  ;;  %1826 = vmatprep.mubr.bf16.mxu1 %v1980_v61 }
  0x8a   :  { %1759 = vmatmul.mubr.bf16.gmra.mrb[52].mxu0 %v1959_v62  ;;  %1827 = vmatmul.mubr.bf16.gmra.mrb[52].mxu1 %v1981_v63 }
  0x8b   :  { %1762 = vmatprep.mubr.bf16.mxu0 %v1962_v0  ;;  %1830 = vmatprep.mubr.bf16.mxu1 %v1982_v1 }
  0x92   :  { %1763 = vmatmul.mubr.bf16.gmra.mrb[56].mxu0 %v1963_v2  ;;  %1831 = vmatmul.mubr.bf16.gmra.mrb[56].mxu1 %v1983_v3 }
  0x93   :  { %1766 = vmatprep.mubr.bf16.mxu0 %v1966_v4 }
  0x9a   :  { %1767 = vmatmul.mubr.bf16.gmra.mrb[60].mxu0 %v1967_v5 }
  0x9b   :  { %1770 = vmatprep.mubr.bf16.mxu0 %v1970_v6 }
  0xa2   :  { %1771 = vmatmul.mubr.bf16.gmra.mrb[64].mxu0 %v1971_v7 }
  0xf5   :  { %v1708_v18 = vpop.f32.mrb[0].mxu0  ;;  %v2249_v19 = vpop.f32.mrb[0].mxu1 }
  0xf6   :  { %v628_v20 = vpop.f32.mrb[1].mxu0  ;;  %v2252_v21 = vpop.f32.mrb[1].mxu1  ;;  %v1141_v28 = vmax.f32 %v1708_v18, 0.0 }
  0xf7   :  { %v1709_v22 = vpop.f32.mrb[2].mxu0  ;;  %v2254_v23 = vpop.f32.mrb[2].mxu1  ;;  %v1139_v26 = vmax.f32 %v628_v20, 0.0 }
  0xf8   :  { %v631_v24 = vpop.f32.mrb[3].mxu0  ;;  %v2256_v25 = vpop.f32.mrb[3].mxu1  ;;  %v1142_v30 = vmax.f32 %v1709_v22, 0.0 }
  0xf9   :  { %v1140_v27 = vmax.f32 %v631_v24, 0.0 }
  0xfb   :  { %v1267_v29 = vadd.f32 %v1140_v27, %v1139_v26 }
  0xfd   :  { %v1268_v31 = vadd.f32 %v1267_v29, %v1141_v28  ;;  %v1712_v32 = vpop.f32.mrb[4].mxu0  ;;  %v2258_v33 = vpop.f32.mrb[4].mxu1 }
  0xfe   :  { %v644_v34 = vpop.f32.mrb[5].mxu0  ;;  %v2260_v35 = vpop.f32.mrb[5].mxu1  ;;  %v1145_v44 = vmax.f32 %v1712_v32, 0.0 }
  0xff   :  { %v1143_v36 = vmax.f32 %v644_v34, 0.0  ;;  %v1269_v37 = vadd.f32 %v1268_v31, %v1142_v30  ;;  %v1713_v38 = vpop.f32.mrb[6].mxu0  ;;  %v2262_v39 = vpop.f32.mrb[6].mxu1 }
 0x100   :  { %v647_v40 = vpop.f32.mrb[7].mxu0  ;;  %v2264_v41 = vpop.f32.mrb[7].mxu1  ;;  %v1146_v46 = vmax.f32 %v1713_v38, 0.0 }
 0x101   :  { %v1270_v42 = vadd.f32 %v1269_v37, %v1143_v36  ;;  %v1144_v43 = vmax.f32 %v647_v40, 0.0 }
 0x103   :  { %v1271_v45 = vadd.f32 %v1270_v42, %v1144_v43 }
 0x105   :  { %v1272_v47 = vadd.f32 %v1271_v45, %v1145_v44  ;;  %v1716_v48 = vpop.f32.mrb[8].mxu0  ;;  %v2266_v49 = vpop.f32.mrb[8].mxu1 }
 0x106   :  { %v660_v50 = vpop.f32.mrb[9].mxu0  ;;  %v2268_v51 = vpop.f32.mrb[9].mxu1  ;;  %v1149_v60 = vmax.f32 %v1716_v48, 0.0 }
 0x107   :  { %v1147_v52 = vmax.f32 %v660_v50, 0.0  ;;  %v1273_v53 = vadd.f32 %v1272_v47, %v1146_v46  ;;  %v1717_v54 = vpop.f32.mrb[10].mxu0  ;;  %v2270_v55 = vpop.f32.mrb[10].mxu1 }
 0x108   :  { %v663_v56 = vpop.f32.mrb[11].mxu0  ;;  %v2272_v57 = vpop.f32.mrb[11].mxu1  ;;  %v1150_v62 = vmax.f32 %v1717_v54, 0.0 }
 0x109   :  { %v1274_v58 = vadd.f32 %v1273_v53, %v1147_v52  ;;  %v1148_v59 = vmax.f32 %v663_v56, 0.0  ;;  %v1425_v56 = vld [vmem:[%s2387_s2 + $0x30] sm:$0xff] }
 0x10b   :  { %v1275_v61 = vadd.f32 %v1274_v58, %v1148_v59  ;;  %v1426_v58 = vld [vmem:[%s2387_s2 + $0x38] sm:$0xff]  ;;  %v1427_v59 = vld [vmem:[%s2387_s2 + $0x40] sm:$0xff] }
 0x10d   :  { %v1276_v63 = vadd.f32 %v1275_v61, %v1149_v60  ;;  %v1720_v0 = vpop.f32.mrb[12].mxu0  ;;  %v2274_v1 = vpop.f32.mrb[12].mxu1  ;;  %v1879_v60 = vpack.c.bf16 %v1426_v58, %v1425_v56  ;;  %v1428_v61 = vld [vmem:[%s2387_s2 + $0x48] sm:$0xff] }
 0x10e   :  { %v676_v2 = vpop.f32.mrb[13].mxu0  ;;  %v2276_v3 = vpop.f32.mrb[13].mxu1  ;;  %v1153_v13 = vmax.f32 %v1720_v0, 0.0  ;;  %v1986_v0 = vmov 0.0  }
 0x10f   :  { %v1151_v4 = vmax.f32 %v676_v2, 0.0  ;;  %v1277_v5 = vadd.f32 %v1276_v63, %v1150_v62  ;;  %v1721_v6 = vpop.f32.mrb[14].mxu0  ;;  %v2278_v7 = vpop.f32.mrb[14].mxu1  ;;  %1866 = vmatprep.mubr.msk.f32.mxu1 %vm1985_vm0, %v1986_v0  ;;  %1880 = vmatpush3.bf16.msra.mxu1 %v1879_v60  ;;  %v1882_v2 = vpack.c.bf16 %v1428_v61, %v1427_v59 }
 0x110   :  { %v679_v9 = vpop.f32.mrb[15].mxu0  ;;  %v2280_v10 = vpop.f32.mrb[15].mxu1  ;;  %v1154_v15 = vmax.f32 %v1721_v6, 0.0  ;;  %1881 = vmatprep.subr.bf16.mxu1 %v1984_v8 }
 0x111   :  { %v1278_v11 = vadd.f32 %v1277_v5, %v1151_v4  ;;  %v1152_v12 = vmax.f32 %v679_v9, 0.0 }
 0x113   :  { %v1279_v14 = vadd.f32 %v1278_v11, %v1152_v12  ;;  %v1429_v11 = vld [vmem:[%s2387_s2 + $0x50] sm:$0xff]  ;;  %v1430_v12 = vld [vmem:[%s2387_s2 + $0x58] sm:$0xff]  ;;  %1883 = vmatpush3.bf16.msra.mxu1 %v1882_v2 }
 0x114   :  { %1884 = vmatprep.subr.bf16.mxu1 %v1984_v8 }
 0x115   :  { %v1280_v16 = vadd.f32 %v1279_v14, %v1153_v13  ;;  %v1724_v17 = vpop.f32.mrb[16].mxu0  ;;  %v2282_v18 = vpop.f32.mrb[16].mxu1 }
 0x116   :  { %v692_v20 = vpop.f32.mrb[17].mxu0  ;;  %v2284_v22 = vpop.f32.mrb[17].mxu1  ;;  %v1157_v34 = vmax.f32 %v1724_v17, 0.0 }
 0x117   :  { %v1155_v24 = vmax.f32 %v692_v20, 0.0  ;;  %v1281_v26 = vadd.f32 %v1280_v16, %v1154_v15  ;;  %v1725_v27 = vpop.f32.mrb[18].mxu0  ;;  %v2286_v28 = vpop.f32.mrb[18].mxu1 }
 0x118   :  { %v695_v29 = vpop.f32.mrb[19].mxu0  ;;  %v2288_v30 = vpop.f32.mrb[19].mxu1  ;;  %v1158_v37 = vmax.f32 %v1725_v27, 0.0  ;;  %v1885_v27 = vpack.c.bf16 %v1430_v12, %v1429_v11 }
 0x119   :  { %v1282_v31 = vadd.f32 %v1281_v26, %v1155_v24  ;;  %v1156_v32 = vmax.f32 %v695_v29, 0.0 }
 0x11a   :  { %1886 = vmatpush3.bf16.msra.mxu1 %v1885_v27 }
 0x11b   :  { %v1283_v36 = vadd.f32 %v1282_v31, %v1156_v32  ;;  %v1431_v32 = vld [vmem:[%s2387_s2 + $0x60] sm:$0xff]  ;;  %1887 = vmatprep.subr.bf16.mxu1 %v1984_v8 }
 0x11d   :  { %v1284_v38 = vadd.f32 %v1283_v36, %v1157_v34  ;;  %v1728_v40 = vpop.f32.mrb[20].mxu0  ;;  %v2290_v42 = vpop.f32.mrb[20].mxu1  ;;  %v1432_v34 = vld [vmem:[%s2387_s2 + $0x68] sm:$0xff] }
 0x11e   :  { %v708_v43 = vpop.f32.mrb[21].mxu0  ;;  %v2292_v44 = vpop.f32.mrb[21].mxu1  ;;  %v1161_v62 = vmax.f32 %v1728_v40, 0.0 }
 0x11f   :  { %v1159_v45 = vmax.f32 %v708_v43, 0.0  ;;  %v1285_v46 = vadd.f32 %v1284_v38, %v1158_v37  ;;  %v1729_v47 = vpop.f32.mrb[22].mxu0  ;;  %v2294_v48 = vpop.f32.mrb[22].mxu1  ;;  %v1888_v38 = vpack.c.bf16 %v1432_v34, %v1431_v32 }
 0x120   :  { %v711_v50 = vpop.f32.mrb[23].mxu0  ;;  %v2296_v52 = vpop.f32.mrb[23].mxu1  ;;  %v1162_v4 = vmax.f32 %v1729_v47, 0.0  ;;  %v1433_v47 = vld [vmem:[%s2387_s2 + $0x70] sm:$0xff] }
 0x121   :  { %v1286_v53 = vadd.f32 %v1285_v46, %v1159_v45  ;;  %v1160_v54 = vmax.f32 %v711_v50, 0.0  ;;  %v1434_v50 = vld [vmem:[%s2387_s2 + $0x78] sm:$0xff]  ;;  %1889 = vmatpush3.bf16.msra.mxu1 %v1888_v38 }
 0x122   :  { %v1891_v0 = vpack.c.bf16 %v1434_v50, %v1433_v47  ;;  %1890 = vmatprep.subr.bf16.mxu1 %v1984_v8 }
 0x123   :  { %v1287_v63 = vadd.f32 %v1286_v53, %v1160_v54 }
 0x125   :  { %v1288_v5 = vadd.f32 %v1287_v63, %v1161_v62  ;;  %v1732_v6 = vpop.f32.mrb[24].mxu0  ;;  %v2310_v9 = vpop.f32.mrb[24].mxu1  ;;  %1892 = vmatpush3.bf16.msra.mxu1 %v1891_v0 }
 0x126   :  { %v724_v13 = vpop.f32.mrb[25].mxu0  ;;  %v2319_v14 = vpop.f32.mrb[25].mxu1  ;;  %v1165_v36 = vmax.f32 %v1732_v6, 0.0 }
 0x127   :  { %v1163_v15 = vmax.f32 %v724_v13, 0.0  ;;  %v1289_v16 = vadd.f32 %v1288_v5, %v1162_v4  ;;  %v1733_v17 = vpop.f32.mrb[26].mxu0  ;;  %v2321_v20 = vpop.f32.mrb[26].mxu1 }
 0x128   :  { %v727_v24 = vpop.f32.mrb[27].mxu0  ;;  %v2323_v26 = vpop.f32.mrb[27].mxu1  ;;  %v1166_v40 = vmax.f32 %v1733_v17, 0.0 }
 0x129   :  { %v1290_v29 = vadd.f32 %v1289_v16, %v1163_v15  ;;  %v1164_v31 = vmax.f32 %v727_v24, 0.0 }
 0x12b   :  { %v1291_v37 = vadd.f32 %v1290_v29, %v1164_v31 }
 0x12d   :  { %v1292_v43 = vadd.f32 %v1291_v37, %v1165_v36  ;;  %v1736_v45 = vpop.f32.mrb[28].mxu0  ;;  %v1804_v46 = vpop.f32.mrb[28].mxu1 }
 0x12e   :  { %v740_v53 = vpop.f32.mrb[29].mxu0  ;;  %v1012_v54 = vpop.f32.mrb[29].mxu1  ;;  %v1237_v5 = vmax.f32 %v1804_v46, 0.0  ;;  %v1169_v11 = vmax.f32 %v1736_v45, 0.0 }
 0x12f   :  { %v1167_v56 = vmax.f32 %v740_v53, 0.0  ;;  %v1293_v58 = vadd.f32 %v1292_v43, %v1166_v40  ;;  %v1737_v59 = vpop.f32.mrb[30].mxu0  ;;  %v1235_v60 = vmax.f32 %v1012_v54, 0.0  ;;  %v1805_v61 = vpop.f32.mrb[30].mxu1 }
 0x130   :  { %v743_v62 = vpop.f32.mrb[31].mxu0  ;;  %v1015_v63 = vpop.f32.mrb[31].mxu1  ;;  %v1238_v13 = vmax.f32 %v1805_v61, 0.0  ;;  %v1170_v16 = vmax.f32 %v1737_v59, 0.0 }
 0x131   :  { %v1294_v2 = vadd.f32 %v1293_v58, %v1167_v56  ;;  %v1168_v4 = vmax.f32 %v743_v62, 0.0  ;;  %v1236_v6 = vmax.f32 %v1015_v63, 0.0 }
 0x133   :  { %v1295_v12 = vadd.f32 %v1294_v2, %v1168_v4  ;;  %v1378_v15 = vadd.f32 %v1236_v6, %v1235_v60 }
 0x135   :  { %v1296_v17 = vadd.f32 %v1295_v12, %v1169_v11  ;;  %v1740_v24 = vpop.f32.mrb[32].mxu0  ;;  %v1379_v27 = vadd.f32 %v1378_v15, %v1237_v5  ;;  %v1808_v29 = vpop.f32.mrb[32].mxu1 }
 0x136   :  { %v756_v31 = vpop.f32.mrb[33].mxu0  ;;  %v1028_v32 = vpop.f32.mrb[33].mxu1  ;;  %v1241_v8 = vmax.f32 %v1808_v29, 0.0  ;;  %v1173_v54 = vmax.f32 %v1740_v24, 0.0 }
 0x137   :  { %v2340_v34 = vadd.f32 %v1296_v17, %v1170_v16  ;;  %v1741_v36 = vpop.f32.mrb[34].mxu0  ;;  %v1239_v37 = vmax.f32 %v1028_v32, 0.0  ;;  %v1380_v38 = vadd.f32 %v1379_v27, %v1238_v13  ;;  %v1809_v40 = vpop.f32.mrb[34].mxu1  ;;  %v1171_v46 = vmax.f32 %v756_v31, 0.0 }
 0x138   :  { %v759_v43 = vpop.f32.mrb[35].mxu0  ;;  %v1031_v45 = vpop.f32.mrb[35].mxu1  ;;  %v1242_v59 = vmax.f32 %v1809_v40, 0.0  ;;  %v1174_v60 = vmax.f32 %v1741_v36, 0.0 }
 0x139   :  { %v1172_v47 = vmax.f32 %v759_v43, 0.0  ;;  %v1381_v50 = vadd.f32 %v1380_v38, %v1239_v37  ;;  %v1240_v53 = vmax.f32 %v1031_v45, 0.0 }
 0x13b   :  { %v1304_v56 = vadd.f32 %v1172_v47, %v1171_v46  ;;  %v1382_v58 = vadd.f32 %v1381_v50, %v1240_v53 }
 0x13d   :  { %v1305_v61 = vadd.f32 %v1304_v56, %v1173_v54  ;;  %v1744_v62 = vpop.f32.mrb[36].mxu0  ;;  %v1383_v63 = vadd.f32 %v1382_v58, %v1241_v8  ;;  %v1812_v0 = vpop.f32.mrb[36].mxu1 }
 0x13e   :  { %v772_v2 = vpop.f32.mrb[37].mxu0  ;;  %v1044_v4 = vpop.f32.mrb[37].mxu1  ;;  %v1245_v31 = vmax.f32 %v1812_v0, 0.0  ;;  %v1177_v36 = vmax.f32 %v1744_v62, 0.0 }
 0x13f   :  { %v1175_v5 = vmax.f32 %v772_v2, 0.0  ;;  %v1306_v6 = vadd.f32 %v1305_v61, %v1174_v60  ;;  %v1745_v11 = vpop.f32.mrb[38].mxu0  ;;  %v1243_v12 = vmax.f32 %v1044_v4, 0.0  ;;  %v1813_v13 = vpop.f32.mrb[38].mxu1  ;;  %v1384_v16 = vadd.f32 %v1383_v63, %v1242_v59 }
 0x140   :  { %v775_v15 = vpop.f32.mrb[39].mxu0  ;;  %v1047_v17 = vpop.f32.mrb[39].mxu1  ;;  %v1246_v38 = vmax.f32 %v1813_v13, 0.0  ;;  %v1178_v43 = vmax.f32 %v1745_v11, 0.0 }
 0x141   :  { %v1307_v27 = vadd.f32 %v1306_v6, %v1175_v5  ;;  %v1176_v24 = vmax.f32 %v775_v15, 0.0  ;;  %v1244_v29 = vmax.f32 %v1047_v17, 0.0  ;;  %v1385_v32 = vadd.f32 %v1384_v16, %v1243_v12 }
 0x143   :  { %v1308_v37 = vadd.f32 %v1307_v27, %v1176_v24  ;;  %v1386_v40 = vadd.f32 %v1385_v32, %v1244_v29 }
 0x145   :  { %v1309_v8 = vadd.f32 %v1308_v37, %v1177_v36  ;;  %v1748_v45 = vpop.f32.mrb[40].mxu0  ;;  %v1816_v46 = vpop.f32.mrb[40].mxu1  ;;  %v1387_v50 = vadd.f32 %v1386_v40, %v1245_v31 }
 0x146   :  { %v788_v47 = vpop.f32.mrb[41].mxu0  ;;  %v1060_v53 = vpop.f32.mrb[41].mxu1  ;;  %v1249_v5 = vmax.f32 %v1816_v46, 0.0  ;;  %v1181_v11 = vmax.f32 %v1748_v45, 0.0 }
 0x147   :  { %v1179_v54 = vmax.f32 %v788_v47, 0.0  ;;  %v1310_v56 = vadd.f32 %v1309_v8, %v1178_v43  ;;  %v1749_v58 = vpop.f32.mrb[42].mxu0  ;;  %v1247_v59 = vmax.f32 %v1060_v53, 0.0  ;;  %v1817_v60 = vpop.f32.mrb[42].mxu1  ;;  %v1388_v63 = vadd.f32 %v1387_v50, %v1246_v38 }
 0x148   :  { %v791_v61 = vpop.f32.mrb[43].mxu0  ;;  %v1063_v0 = vpop.f32.mrb[43].mxu1  ;;  %v1250_v13 = vmax.f32 %v1817_v60, 0.0  ;;  %v1182_v16 = vmax.f32 %v1749_v58, 0.0 }
 0x149   :  { %v1311_v2 = vadd.f32 %v1310_v56, %v1179_v54  ;;  %v1180_v62 = vmax.f32 %v791_v61, 0.0  ;;  %v1248_v4 = vmax.f32 %v1063_v0, 0.0  ;;  %v1389_v6 = vadd.f32 %v1388_v63, %v1247_v59 }
 0x14b   :  { %v1312_v12 = vadd.f32 %v1311_v2, %v1180_v62  ;;  %v1390_v15 = vadd.f32 %v1389_v6, %v1248_v4 }
 0x14d   :  { %v1313_v17 = vadd.f32 %v1312_v12, %v1181_v11  ;;  %v1752_v27 = vpop.f32.mrb[44].mxu0  ;;  %v1820_v24 = vpop.f32.mrb[44].mxu1  ;;  %v1391_v31 = vadd.f32 %v1390_v15, %v1249_v5 }
 0x14e   :  { %v804_v29 = vpop.f32.mrb[45].mxu0  ;;  %v1076_v32 = vpop.f32.mrb[45].mxu1  ;;  %v1253_v54 = vmax.f32 %v1820_v24, 0.0  ;;  %v1185_v58 = vmax.f32 %v1752_v27, 0.0 }
 0x14f   :  { %v1183_v36 = vmax.f32 %v804_v29, 0.0  ;;  %v1314_v37 = vadd.f32 %v1313_v17, %v1182_v16  ;;  %v1753_v38 = vpop.f32.mrb[46].mxu0  ;;  %v1251_v40 = vmax.f32 %v1076_v32, 0.0  ;;  %v1821_v43 = vpop.f32.mrb[46].mxu1  ;;  %v1392_v47 = vadd.f32 %v1391_v31, %v1250_v13 }
 0x150   :  { %v807_v8 = vpop.f32.mrb[47].mxu0  ;;  %v1079_v46 = vpop.f32.mrb[47].mxu1  ;;  %v1254_v60 = vmax.f32 %v1821_v43, 0.0  ;;  %v1186_v63 = vmax.f32 %v1753_v38, 0.0 }
 0x151   :  { %v1315_v50 = vadd.f32 %v1314_v37, %v1183_v36  ;;  %v1184_v45 = vmax.f32 %v807_v8, 0.0  ;;  %v1252_v53 = vmax.f32 %v1079_v46, 0.0  ;;  %v1393_v56 = vadd.f32 %v1392_v47, %v1251_v40 }
 0x153   :  { %v1316_v59 = vadd.f32 %v1315_v50, %v1184_v45  ;;  %v1394_v61 = vadd.f32 %v1393_v56, %v1252_v53 }
 0x155   :  { %v1317_v0 = vadd.f32 %v1316_v59, %v1185_v58  ;;  %v1756_v2 = vpop.f32.mrb[48].mxu0  ;;  %v1824_v62 = vpop.f32.mrb[48].mxu1  ;;  %v1395_v5 = vadd.f32 %v1394_v61, %v1253_v54 }
 0x156   :  { %v820_v4 = vpop.f32.mrb[49].mxu0  ;;  %v1092_v6 = vpop.f32.mrb[49].mxu1  ;;  %v1257_v36 = vmax.f32 %v1824_v62, 0.0  ;;  %v1189_v38 = vmax.f32 %v1756_v2, 0.0 }
 0x157   :  { %v1187_v11 = vmax.f32 %v820_v4, 0.0  ;;  %v1318_v12 = vadd.f32 %v1317_v0, %v1186_v63  ;;  %v1757_v13 = vpop.f32.mrb[50].mxu0  ;;  %v1255_v15 = vmax.f32 %v1092_v6, 0.0  ;;  %v1825_v16 = vpop.f32.mrb[50].mxu1  ;;  %v1396_v29 = vadd.f32 %v1395_v5, %v1254_v60 }
 0x158   :  { %v823_v17 = vpop.f32.mrb[51].mxu0  ;;  %v1095_v24 = vpop.f32.mrb[51].mxu1  ;;  %v1258_v43 = vmax.f32 %v1825_v16, 0.0  ;;  %v1190_v47 = vmax.f32 %v1757_v13, 0.0 }
 0x159   :  { %v1319_v31 = vadd.f32 %v1318_v12, %v1187_v11  ;;  %v1188_v27 = vmax.f32 %v823_v17, 0.0  ;;  %v1256_v32 = vmax.f32 %v1095_v24, 0.0  ;;  %v1397_v37 = vadd.f32 %v1396_v29, %v1255_v15 }
 0x15b   :  { %v1320_v40 = vadd.f32 %v1319_v31, %v1188_v27  ;;  %v1398_v8 = vadd.f32 %v1397_v37, %v1256_v32 }
 0x15d   :  { %v1321_v46 = vadd.f32 %v1320_v40, %v1189_v38  ;;  %v1760_v50 = vpop.f32.mrb[52].mxu0  ;;  %v1828_v45 = vpop.f32.mrb[52].mxu1  ;;  %v1399_v54 = vadd.f32 %v1398_v8, %v1257_v36 }
 0x15e   :  { %v836_v53 = vpop.f32.mrb[53].mxu0  ;;  %v1108_v56 = vpop.f32.mrb[53].mxu1  ;;  %v1261_v11 = vmax.f32 %v1828_v45, 0.0  ;;  %v1193_v13 = vmax.f32 %v1760_v50, 0.0 }
 0x15f   :  { %v1191_v58 = vmax.f32 %v836_v53, 0.0  ;;  %v1322_v59 = vadd.f32 %v1321_v46, %v1190_v47  ;;  %v1761_v60 = vpop.f32.mrb[54].mxu0  ;;  %v1259_v61 = vmax.f32 %v1108_v56, 0.0  ;;  %v1829_v63 = vpop.f32.mrb[54].mxu1  ;;  %v1400_v4 = vadd.f32 %v1399_v54, %v1258_v43 }
 0x160   :  { %v839_v0 = vpop.f32.mrb[55].mxu0  ;;  %v1111_v62 = vpop.f32.mrb[55].mxu1  ;;  %v1262_v16 = vmax.f32 %v1829_v63, 0.0  ;;  %v1194_v29 = vmax.f32 %v1761_v60, 0.0 }
 0x161   :  { %v1323_v5 = vadd.f32 %v1322_v59, %v1191_v58  ;;  %v1192_v2 = vmax.f32 %v839_v0, 0.0  ;;  %v1260_v6 = vmax.f32 %v1111_v62, 0.0  ;;  %v1401_v12 = vadd.f32 %v1400_v4, %v1259_v61 }
 0x162   :  { %v1298_v4 = vrot.slane %v2340_v34, 4 }
 0x163   :  { %v1324_v15 = vadd.f32 %v1323_v5, %v1192_v2  ;;  %v1402_v17 = vadd.f32 %v1401_v12, %v1260_v6 }
 0x165   :  { %v1325_v24 = vadd.f32 %v1324_v15, %v1193_v13  ;;  %v1764_v31 = vpop.f32.mrb[56].mxu0  ;;  %v1832_v27 = vpop.f32.mrb[56].mxu1  ;;  %v1403_v36 = vadd.f32 %v1402_v17, %v1261_v11 }
 0x166   :  { %v852_v32 = vpop.f32.mrb[57].mxu0  ;;  %v1124_v37 = vpop.f32.mrb[57].mxu1  ;;  %v1265_v58 = vmax.f32 %v1832_v27, 0.0  ;;  %v1197_v60 = vmax.f32 %v1764_v31, 0.0 }
 0x167   :  { %v1195_v38 = vmax.f32 %v852_v32, 0.0  ;;  %v1326_v40 = vadd.f32 %v1325_v24, %v1194_v29  ;;  %v1765_v43 = vpop.f32.mrb[58].mxu0  ;;  %v1263_v8 = vmax.f32 %v1124_v37, 0.0  ;;  %v1833_v47 = vpop.f32.mrb[58].mxu1  ;;  %v1404_v53 = vadd.f32 %v1403_v36, %v1262_v16 }
 0x168   :  { %v855_v46 = vpop.f32.mrb[59].mxu0  ;;  %v1127_v45 = vpop.f32.mrb[59].mxu1  ;;  %v1266_v63 = vmax.f32 %v1833_v47, 0.0  ;;  %v1198_v62 = vmax.f32 %v1765_v43, 0.0  ;;  %v1299_v29 = vadd.f32 %v1298_v4, %v2340_v34 }
 0x169   :  { %v1327_v54 = vadd.f32 %v1326_v40, %v1195_v38  ;;  %v1196_v50 = vmax.f32 %v855_v46, 0.0  ;;  %v1264_v56 = vmax.f32 %v1127_v45, 0.0  ;;  %v1405_v59 = vadd.f32 %v1404_v53, %v1263_v8 }
 0x16a   :  { %v1300_v36 = vrot.slane %v1299_v29, 2 }
 0x16b   :  { %v1328_v61 = vadd.f32 %v1327_v54, %v1196_v50  ;;  %v1406_v0 = vadd.f32 %v1405_v59, %v1264_v56 }
 0x16c   :  { %v1301_v53 = vadd.f32 %v1300_v36, %v1299_v29  ;;  %v1210_v29 = vmax.f32 %v2254_v23, 0.0  ;;  %v1212_v36 = vmax.f32 %v2264_v41, 0.0  ;;  %v1216_v23 = vmax.f32 %v2272_v57, 0.0 }
 0x16d   :  { %v1329_v5 = vadd.f32 %v1328_v61, %v1197_v60  ;;  %v1768_v2 = vpop.f32.mrb[60].mxu0  ;;  %v1407_v11 = vadd.f32 %v1406_v0, %v1265_v58  ;;  %v1207_v0 = vmax.f32 %v2252_v21, 0.0  ;;  %v1219_v41 = vmax.f32 %v2276_v3, 0.0 }
 0x16e   :  { %v868_v6 = vpop.f32.mrb[61].mxu0  ;;  %v1201_v27 = vmax.f32 %v1768_v2, 0.0  ;;  %v1302_v34 = vrot.slane %v1301_v53, 1  ;;  %v1208_v2 = vmax.f32 %v2256_v25, 0.0  ;;  %v1223_v57 = vmax.f32 %v2284_v22, 0.0 }
 0x16f   :  { %v1199_v12 = vmax.f32 %v868_v6, 0.0  ;;  %v1330_v13 = vadd.f32 %v1329_v5, %v1198_v62  ;;  %v1769_v15 = vpop.f32.mrb[62].mxu0  ;;  %v2343_v17 = vadd.f32 %v1407_v11, %v1266_v63  ;;  %v1226_v3 = vmax.f32 %v2286_v28, 0.0 }
 0x170   :  { %v871_v16 = vpop.f32.mrb[63].mxu0  ;;  %v1202_v37 = vmax.f32 %v1769_v15, 0.0  ;;  %v1303_v5 = vadd.f32 %v1302_v34, %v1301_v53  ;;  %v1218_v53 = vmax.f32 %v2270_v55, 0.0  ;;  %v1225_v55 = vmax.f32 %v2282_v18, 0.0 }
 0x171   :  { %v1331_v24 = vadd.f32 %v1330_v13, %v1199_v12  ;;  %v1200_v31 = vmax.f32 %v871_v16, 0.0  ;;  %v1209_v12 = vmax.f32 %v2249_v19, 0.0  ;;  %v1214_v19 = vmax.f32 %v2262_v39, 0.0 }
 0x172   :  { %v1415_v16 = vmul.f32 0.00390625, %v1303_v5  ;;  %v1221_v39 = vmax.f32 %v2274_v1, 0.0  ;;  %v1228_v1 = vmax.f32 %v2296_v52, 0.0  ;;  %v1230_v22 = vmax.f32 %v2294_v48, 0.0 }
 0x173   :  { %v1332_v32 = vadd.f32 %v1331_v24, %v1200_v31  ;;  %v1231_v18 = vmax.f32 %v2319_v14, 0.0  ;;  %v1232_v28 = vmax.f32 %v2323_v26, 0.0 }
 0x175   :  { %v1333_v38 = vadd.f32 %v1332_v32, %v1201_v27  ;;  %v1772_v40 = vpop.f32.mrb[64].mxu0  ;;  %v1211_v27 = vmax.f32 %v2260_v35, 0.0  ;;  %v1217_v35 = vmax.f32 %v2266_v49, 0.0  ;;  %v1224_v49 = vmax.f32 %v2288_v30, 0.0 }
 0x176   :  { %v884_v43 = vpop.f32.mrb[65].mxu0  ;;  %v1205_v58 = vmax.f32 %v1772_v40, 0.0  ;;  %v1409_v30 = vrot.slane %v2343_v17, 4 }
 0x177   :  { %v1334_v8 = vadd.f32 %v1333_v38, %v1202_v37  ;;  %v1773_v47 = vpop.f32.mrb[66].mxu0  ;;  %v1203_v54 = vmax.f32 %v884_v43, 0.0  ;;  %v1213_v37 = vmax.f32 %v2258_v33, 0.0  ;;  %v1215_v43 = vmax.f32 %v2268_v51, 0.0 }
 0x178   :  { %v887_v46 = vpop.f32.mrb[67].mxu0  ;;  %v1206_v61 = vmax.f32 %v1773_v47, 0.0  ;;  %v1220_v33 = vmax.f32 %v2280_v10, 0.0  ;;  %v1222_v51 = vmax.f32 %v2278_v7, 0.0  ;;  %v1227_v10 = vmax.f32 %v2292_v44, 0.0 }
 0x179   :  { %v1335_v45 = vrot.slane %v1334_v8, 4  ;;  %v1204_v50 = vmax.f32 %v887_v46, 0.0  ;;  %v1229_v7 = vmax.f32 %v2290_v42, 0.0  ;;  %v1410_v44 = vadd.f32 %v1409_v30, %v2343_v17 }
 0x17b   :  { %v1336_v56 = vadd.f32 %v1335_v45, %v1334_v8  ;;  %v1341_v59 = vadd.f32 %v1204_v50, %v1203_v54 }
 0x17d   :  { %v1337_v60 = vrot.slane %v1336_v56, 2  ;;  %v1342_v63 = vadd.f32 %v1341_v59, %v1205_v58 }
 0x17f   :  { %v1338_v4 = vadd.f32 %v1337_v60, %v1336_v56  ;;  %v1343_v62 = vadd.f32 %v1342_v63, %v1206_v61 }
 0x181   :  { %v1339_v6 = vrot.slane %v1338_v4, 1  ;;  %v1344_v11 = vadd.f32 %v1343_v62, %v1207_v0 }
 0x183   :  { %v1340_v13 = vadd.f32 %v1339_v6, %v1338_v4  ;;  %v1345_v15 = vadd.f32 %v1344_v11, %v1208_v2  ;;  %v1233_v6 = vmax.f32 %v2310_v9, 0.0  ;;  %v1234_v11 = vmax.f32 %v2321_v20, 0.0  ;;  %v1600_v20 = vld [vmem:[%s2388_s3] ss:$0 sm:$0xff] }
 0x185   :  { %v1416_v24 = vmul.f32 0.00390625, %v1340_v13  ;;  %v1346_v31 = vadd.f32 %v1345_v15, %v1209_v12  ;;  %v1411_v12 = vrot.slane %v1410_v44, 2 }
 0x187   :  { %v1347_v21 = vadd.f32 %v1346_v31, %v1210_v29  ;;  %v2351_v32 = vsel %vm1446_vm1, %v1416_v24, %v1415_v16  ;;  %v1412_v15 = vadd.f32 %v1411_v12, %v1410_v44 }
 0x189   :  { %v1348_v25 = vadd.f32 %v1347_v21, %v1211_v27  ;;  %v1413_v24 = vrot.slane %v1412_v15, 1 }
 0x18b   :  { %v1349_v38 = vadd.f32 %v1348_v25, %v1212_v36  ;;  %v1414_v27 = vadd.f32 %v1413_v24, %v1412_v15 }
 0x18d   :  { %v1350_v40 = vadd.f32 %v1349_v38, %v1213_v37  ;;  %v1418_v17 = vmul.f32 0.00390625, %v1414_v27 }
 0x18f   :  { %v1351_v8 = vadd.f32 %v1350_v40, %v1214_v19 }
 0x191   :  { %v1352_v47 = vadd.f32 %v1351_v8, %v1215_v43 }
 0x193   :  { %v1353_v46 = vadd.f32 %v1352_v47, %v1216_v23 }
 0x195   :  { %v1354_v45 = vadd.f32 %v1353_v46, %v1217_v35 }
 0x197   :  { %v1355_v54 = vadd.f32 %v1354_v45, %v1218_v53 }
 0x199   :  { %v1356_v50 = vadd.f32 %v1355_v54, %v1219_v41 }
 0x19b   :  { %v1357_v56 = vadd.f32 %v1356_v50, %v1220_v33 }
 0x19d   :  { %v1358_v58 = vadd.f32 %v1357_v56, %v1221_v39 }
 0x19f   :  { %v1359_v59 = vadd.f32 %v1358_v58, %v1222_v51 }
 0x1a1   :  { %v1360_v34 = vadd.f32 %v1359_v59, %v1223_v57 }
 0x1a3   :  { %v1361_v60 = vadd.f32 %v1360_v34, %v1224_v49 }
 0x1a5   :  { %v1362_v61 = vadd.f32 %v1361_v60, %v1225_v55 }
 0x1a7   :  { %v1363_v63 = vadd.f32 %v1362_v61, %v1226_v3 }
 0x1a9   :  { %v1364_v0 = vadd.f32 %v1363_v63, %v1227_v10 }
 0x1ab   :  { %v1365_v4 = vadd.f32 %v1364_v0, %v1228_v1 }
 0x1ad   :  { %v1366_v62 = vadd.f32 %v1365_v4, %v1229_v7 }
 0x1af   :  { %v1367_v5 = vadd.f32 %v1366_v62, %v1230_v22 }
 0x1b1   :  { %v1368_v2 = vadd.f32 %v1367_v5, %v1231_v18 }
 0x1b3   :  { %v1369_v52 = vadd.f32 %v1368_v2, %v1232_v28 }
 0x1b5   :  { %v1370_v42 = vadd.f32 %v1369_v52, %v1233_v6 }
 0x1b7   :  { %v1371_v13 = vadd.f32 %v1370_v42, %v1234_v11 }
 0x1b9   :  { %v1372_v48 = vrot.slane %v1371_v13, 4 }
 0x1bb   :  { %v1373_v16 = vadd.f32 %v1372_v48, %v1371_v13 }
 0x1bd   :  { %v1374_v29 = vrot.slane %v1373_v16, 2 }
 0x1bf   :  { %v1375_v14 = vadd.f32 %v1374_v29, %v1373_v16 }
 0x1c1   :  { %v1376_v31 = vrot.slane %v1375_v14, 1 }
 0x1c3   :  { %v1377_v26 = vadd.f32 %v1376_v31, %v1375_v14 }
 0x1c5   :  { %v1417_v21 = vmul.f32 0.00390625, %v1377_v26 }
 0x1c7   :  { %v1449_v9 = vsel %vm1448_vm2, %v1417_v21, %v2351_v32 }
 0x1c8   :  { %v1451_v36 = vsel %vm1450_vm3, %v1418_v17, %v1449_v9 }
 0x1c9   :  { %1867 = vmatmul.mubr.f32.vlgmr.msra.gmra.mrb[60].mxu1 %v1451_v36 }
 0x29c   :  { %v1519_v25 = vpop.f32.mrb[60].mxu1 }
 0x29d   :  { %v1520_v37 = vadd.f32 %v1600_v20, %v1519_v25  ;;  %v1868_v38 = vpop.f32.mrb[61].mxu1 }
 0x29f   :  { %1523 = vst [vmem:[%s2389_s4] sm:$0xf] %v1520_v37 }

</bundles_post_ra>
